<compile_context>
chip_gen: v7x
topology: tpu7x:2x2x1
jax: 0.10.0
libtpu: 0.0.40
codegen_flags: <defaults>
</compile_context>

<pallas_src>
import math

import jax
import jax.numpy as jnp
from jax.experimental import pallas as pl
from jax.experimental.pallas import tpu as pltpu

D_MODEL = 32       # input_size / d_model
NUM_HEADS = 4
HEAD_DIM = D_MODEL // NUM_HEADS
D_FF = 64          # hidden_size / d_ff
EPS = 1e-5         # nn.LayerNorm default
VEC_COLS = 128     # lane-padded width of the packed small-vector slab

# rows of the packed vector slab
_B1, _B2, _G1, _BE1, _G2, _BE2 = 0, 1, 2, 3, 4, 5


def _layer_norm(h, gamma, beta):
    mean = jnp.mean(h, axis=-1, keepdims=True)
    var = jnp.mean((h - mean) ** 2, axis=-1, keepdims=True)
    return (h - mean) * jax.lax.rsqrt(var + EPS) * gamma + beta


def encoder_kernel(x_ref, wq_ref, wo_ref, w1_ref, w2_ref, vec_ref, o_ref):
    TB, S, D = x_ref.shape          # batch-tile, seq, d_model (static)
    R = TB * S                      # rows per grid step
    H, HD = NUM_HEADS, HEAD_DIM

    x = x_ref[...].astype(jnp.float32).reshape(R, D)        # (R, D)

    # [#7] read only the needed rows of the packed vector slab via ref slices
    b1 = vec_ref[_B1:_B1 + 1, :D_FF]                          # (1, D_FF)
    b2 = vec_ref[_B2:_B2 + 1, :D]                             # (1, D)
    g1 = vec_ref[_G1:_G1 + 1, :D]
    be1 = vec_ref[_BE1:_BE1 + 1, :D]
    g2 = vec_ref[_G2:_G2 + 1, :D]
    be2 = vec_ref[_BE2:_BE2 + 1, :D]

    # --- multi-head self-attention (q, k, v share the query projection) ---
    q = jnp.dot(x, wq_ref[...], preferred_element_type=jnp.float32)   # (R, D)
    q3 = q.reshape(TB, S, D)                                           # leading split

    # [#1] merge (batch-tile, head) into one leading batch dim: (TB*H, S, HD)
    kv = jnp.stack([q3[:, :, h * HD:(h + 1) * HD] for h in range(H)], axis=1)
    kv = kv.reshape(TB * H, S, HD)                 # key/value side (unscaled)
    qs = kv * (1.0 / math.sqrt(D_MODEL))           # fold scale into query side

    score = jnp.einsum('bqd,bkd->bqk', qs, kv,
                       preferred_element_type=jnp.float32)      # (TB*H, S, S)
    score = score - jnp.max(score, axis=-1, keepdims=True)
    p = jnp.exp(score)
    p = p * pl.reciprocal(jnp.sum(p, axis=-1, keepdims=True), approx=True)
    ah = jnp.einsum('bqk,bkd->bqd', p, kv,
                    preferred_element_type=jnp.float32)         # (TB*H, S, HD)

    ah4 = ah.reshape(TB, H, S, HD)                               # leading split
    attn = jnp.concatenate([ah4[:, h] for h in range(H)], axis=-1)   # (TB, S, D)
    attn = jnp.dot(attn.reshape(R, D), wo_ref[...],
                   preferred_element_type=jnp.float32)           # (R, D)

    # --- residual + layernorm 1 (dropout = identity, eval mode) ---
    n1 = _layer_norm(x + attn, g1, be1)

    # --- feed forward ---
    ff = jnp.dot(n1, w1_ref[...], preferred_element_type=jnp.float32) + b1
    ff = jnp.maximum(ff, 0.0)
    ff = jnp.dot(ff, w2_ref[...], preferred_element_type=jnp.float32) + b2

    # --- residual + layernorm 2 ---
    out = _layer_norm(ff + n1, g2, be2)                          # (R, D)

    # [#2] one end-of-step relayout (R, D) -> (TB, S*D) so the output store is
    # lane-dense instead of S masked 32/128-lane stores per batch row.
    out3 = out.reshape(TB, S, D)
    dense = jnp.concatenate([out3[:, s, :] for s in range(S)], axis=-1)  # (TB, S*D)
    o_ref[0] = dense.astype(o_ref.dtype)


def _pick_batch_tile(B, S, target_rows=2048):
    """Largest divisor of B with TB*S <= ~target_rows, then forced to give
    at least 2 grid steps when B >= 2 (v7x second TensorCore, item #4)."""
    tb = max(1, min(B, max(1, target_rows // max(1, S))))
    while B % tb:
        tb -= 1
    if B >= 2 and B // tb < 2:
        tb = max(1, B // 2)
        while B % tb:
            tb -= 1
    return tb


def encoder_forward(x, params, *, target_rows=2048):
    B, S, D = x.shape
    assert D == D_MODEL
    assert D_FF <= VEC_COLS and D <= VEC_COLS

    TB = _pick_batch_tile(B, S, target_rows)
    G = B // TB
    SD = S * D

    # pre-transpose PyTorch (out, in) weights so the kernel does y = x @ W
    wq = params["wq"].T                      # (D, D)
    wo = params["wo"].T                      # (D, D)
    w1 = params["w1"].T                      # (D, D_FF)
    w2 = params["w2"].T                      # (D_FF, D)

    # pack the six small vectors into one lane-padded slab
    vecs = jnp.zeros((8, VEC_COLS), jnp.float32)
    vecs = vecs.at[_B1, :D_FF].set(params["b1"].astype(jnp.float32))
    vecs = vecs.at[_B2, :D].set(params["b2"].astype(jnp.float32))
    vecs = vecs.at[_G1, :D].set(params["g1"].astype(jnp.float32))
    vecs = vecs.at[_BE1, :D].set(params["be1"].astype(jnp.float32))
    vecs = vecs.at[_G2, :D].set(params["g2"].astype(jnp.float32))
    vecs = vecs.at[_BE2, :D].set(params["be2"].astype(jnp.float32))

    def full2d(shape):
        return pl.BlockSpec(shape, lambda b: (0, 0))

    grid_spec = pltpu.PrefetchScalarGridSpec(
        num_scalar_prefetch=0,
        grid=(G,),
        in_specs=[
            pl.BlockSpec((TB, S, D), lambda b: (b, 0, 0)),   # x (batch tile)
            full2d((D, D)),                                  # wq
            full2d((D, D)),                                  # wo
            full2d((D, D_FF)),                               # w1
            full2d((D_FF, D)),                               # w2
            full2d((8, VEC_COLS)),                           # packed vectors
        ],
        # [#2] lane-dense output block: last two dims equal full array dims.
        out_specs=pl.BlockSpec((1, TB, SD), lambda b: (b, 0, 0)),
    )

    out = pl.pallas_call(
        encoder_kernel,
        out_shape=jax.ShapeDtypeStruct((G, TB, SD), x.dtype),
        grid_spec=grid_spec,
        compiler_params=pltpu.CompilerParams(
            dimension_semantics=("parallel",),
            vmem_limit_bytes=48 * 1024 * 1024),
    )(x, wq, wo, w1, w2, vecs)

    # free reshape (row-major order matches (B, S, D))
    return out.reshape(B, S, D)


def encoder_reference(x, params):
    """Pure-JAX reference with the same (faithfully reproduced) semantics."""
    x = x.astype(jnp.float32)
    B, S, D = x.shape
    q = jnp.einsum('bsd,ed->bse', x, params["wq"])          # shared projection
    scale = 1.0 / math.sqrt(D_MODEL)
    qh = q.reshape(B, S, NUM_HEADS, HEAD_DIM)
    score = jnp.einsum('bqhd,bkhd->bhqk', qh, qh) * scale
    p = jax.nn.softmax(score, axis=-1)
    attn = jnp.einsum('bhqk,bkhd->bqhd', p, qh).reshape(B, S, D)
    attn = jnp.einsum('bsd,ed->bse', attn, params["wo"])

    def ln(h, g, b):
        m = jnp.mean(h, -1, keepdims=True)
        v = jnp.mean((h - m) ** 2, -1, keepdims=True)
        return (h - m) / jnp.sqrt(v + EPS) * g + b

    n1 = ln(x + attn, params["g1"], params["be1"])
    ff = jnp.maximum(jnp.einsum('bsd,fd->bsf', n1, params["w1"]) + params["b1"], 0.0)
    ff = jnp.einsum('bsf,df->bsd', ff, params["w2"]) + params["b2"]
    return ln(ff + n1, params["g2"], params["be2"])


def init_params(key):
    ks = jax.random.split(key, 6)
    s = 0.02
    return {
        "wq": s * jax.random.normal(ks[0], (D_MODEL, D_MODEL), jnp.float32),
        "wo": s * jax.random.normal(ks[1], (D_MODEL, D_MODEL), jnp.float32),
        "w1": s * jax.random.normal(ks[2], (D_FF, D_MODEL), jnp.float32),
        "b1": s * jax.random.normal(ks[3], (D_FF,), jnp.float32),
        "w2": s * jax.random.normal(ks[4], (D_MODEL, D_FF), jnp.float32),
        "b2": s * jax.random.normal(ks[5], (D_MODEL,), jnp.float32),
        "g1": jnp.ones((D_MODEL,), jnp.float32),
        "be1": jnp.zeros((D_MODEL,), jnp.float32),
        "g2": jnp.ones((D_MODEL,), jnp.float32),
        "be2": jnp.zeros((D_MODEL,), jnp.float32),
    }


if __name__ == "__main__":
    key = jax.random.PRNGKey(0)
    kp, kx = jax.random.split(key)
    params = init_params(kp)

    B, S = 2, 8
    x = jax.random.normal(kx, (B, S, D_MODEL), jnp.float32)

    out = jax.block_until_ready(encoder_forward(x, params))
    assert out.shape == (B, S, D_MODEL), out.shape
    assert bool(jnp.all(jnp.isfinite(out)))

    ref = encoder_reference(x, params)
    max_err = float(jnp.max(jnp.abs(out.astype(jnp.float32) - ref)))
    assert max_err < 2e-2, f"mismatch vs reference: {max_err}"

    print("KERNEL_OK")
</pallas_src>

<mosaic_0001>
module attributes {stable_mosaic.version = 11 : i64} {
  func.func @encoder_kernel(%arg0: i32, %arg1: memref<1x8x32xf32, #tpu.memory_space<vmem>>, %arg2: memref<32x32xf32, #tpu.memory_space<vmem>>, %arg3: memref<32x32xf32, #tpu.memory_space<vmem>>, %arg4: memref<32x64xf32, #tpu.memory_space<vmem>>, %arg5: memref<64x32xf32, #tpu.memory_space<vmem>>, %arg6: memref<8x128xf32, #tpu.memory_space<vmem>>, %arg7: memref<1x1x256xf32, #tpu.memory_space<vmem>>) attributes {dimension_semantics = [#tpu.dimension_semantics<parallel>], iteration_bounds = array<i64: 2>, scalar_prefetch = 0 : i64, scratch_operands = 0 : i64, tpu.core_type = #tpu.core_type<tc>, window_params = [{transform_indices = @transform_0, window_bounds = array<i64: 1, 8, 32>}, {pipeline_mode = #tpu.pipeline_mode<synchronous>, transform_indices = @transform_1, window_bounds = array<i64: 32, 32>}, {pipeline_mode = #tpu.pipeline_mode<synchronous>, transform_indices = @transform_2, window_bounds = array<i64: 32, 32>}, {pipeline_mode = #tpu.pipeline_mode<synchronous>, transform_indices = @transform_3, window_bounds = array<i64: 32, 64>}, {pipeline_mode = #tpu.pipeline_mode<synchronous>, transform_indices = @transform_4, window_bounds = array<i64: 64, 32>}, {pipeline_mode = #tpu.pipeline_mode<synchronous>, transform_indices = @transform_5, window_bounds = array<i64: 8, 128>}, {transform_indices = @transform_6, window_bounds = array<i64: 1, 1, 256>}]} {
    %c0 = arith.constant 0 : index
    %c0_0 = arith.constant 0 : index
    %c0_1 = arith.constant 0 : index
    %0 = vector.load %arg1[%c0, %c0_0, %c0_1] : memref<1x8x32xf32, #tpu.memory_space<vmem>>, vector<1x8x32xf32>
    %1 = vector.shape_cast %0 : vector<1x8x32xf32> to vector<8x32xf32>
    %c0_2 = arith.constant 0 : index
    %c0_3 = arith.constant 0 : index
    %2 = vector.load %arg6[%c0_2, %c0_3] : memref<8x128xf32, #tpu.memory_space<vmem>>, vector<1x64xf32>
    %c1 = arith.constant 1 : index
    %c0_4 = arith.constant 0 : index
    %3 = vector.load %arg6[%c1, %c0_4] : memref<8x128xf32, #tpu.memory_space<vmem>>, vector<1x32xf32>
    %c2 = arith.constant 2 : index
    %c0_5 = arith.constant 0 : index
    %4 = vector.load %arg6[%c2, %c0_5] : memref<8x128xf32, #tpu.memory_space<vmem>>, vector<1x32xf32>
    %c3 = arith.constant 3 : index
    %c0_6 = arith.constant 0 : index
    %5 = vector.load %arg6[%c3, %c0_6] : memref<8x128xf32, #tpu.memory_space<vmem>>, vector<1x32xf32>
    %c4 = arith.constant 4 : index
    %c0_7 = arith.constant 0 : index
    %6 = vector.load %arg6[%c4, %c0_7] : memref<8x128xf32, #tpu.memory_space<vmem>>, vector<1x32xf32>
    %c5 = arith.constant 5 : index
    %c0_8 = arith.constant 0 : index
    %7 = vector.load %arg6[%c5, %c0_8] : memref<8x128xf32, #tpu.memory_space<vmem>>, vector<1x32xf32>
    %c0_9 = arith.constant 0 : index
    %c0_10 = arith.constant 0 : index
    %8 = vector.load %arg2[%c0_9, %c0_10] : memref<32x32xf32, #tpu.memory_space<vmem>>, vector<32x32xf32>
    %cst = arith.constant dense<0.000000e+00> : vector<8x32xf32>
    %9 = tpu.matmul %1, %8, %cst {dimension_numbers = #tpu.dot_dimension_numbers<[1], [0], [0], [1], [0, 0, 1, 1], [], []>} : vector<8x32xf32>, vector<32x32xf32>, vector<8x32xf32> -> vector<8x32xf32>
    %10 = vector.shape_cast %9 : vector<8x32xf32> to vector<1x8x32xf32>
    %11 = vector.extract_strided_slice %10 {offsets = [0, 0, 0], sizes = [1, 8, 8], strides = [1, 1, 1]} : vector<1x8x32xf32> to vector<1x8x8xf32>
    %12 = vector.extract_strided_slice %10 {offsets = [0, 0, 8], sizes = [1, 8, 8], strides = [1, 1, 1]} : vector<1x8x32xf32> to vector<1x8x8xf32>
    %13 = vector.extract_strided_slice %10 {offsets = [0, 0, 16], sizes = [1, 8, 8], strides = [1, 1, 1]} : vector<1x8x32xf32> to vector<1x8x8xf32>
    %14 = vector.extract_strided_slice %10 {offsets = [0, 0, 24], sizes = [1, 8, 8], strides = [1, 1, 1]} : vector<1x8x32xf32> to vector<1x8x8xf32>
    %15 = vector.shape_cast %11 : vector<1x8x8xf32> to vector<1x1x8x8xf32>
    %16 = vector.shape_cast %12 : vector<1x8x8xf32> to vector<1x1x8x8xf32>
    %17 = vector.shape_cast %13 : vector<1x8x8xf32> to vector<1x1x8x8xf32>
    %18 = vector.shape_cast %14 : vector<1x8x8xf32> to vector<1x1x8x8xf32>
    %19 = tpu.concatenate %15, %16, %17, %18 in 1 : vector<1x1x8x8xf32>, vector<1x1x8x8xf32>, vector<1x1x8x8xf32>, vector<1x1x8x8xf32> -> vector<1x4x8x8xf32>
    %20 = vector.shape_cast %19 : vector<1x4x8x8xf32> to vector<4x8x8xf32>
    %cst_11 = arith.constant 0.176776692 : f32
    %21 = vector.broadcast %cst_11 : f32 to vector<4x8x8xf32>
    %22 = arith.mulf %20, %21 : vector<4x8x8xf32>
    "tpu.trace_start"() <{level = 10 : i32, message = "bqd,bkd->bqk"}> : () -> ()
    %cst_12 = arith.constant dense<0.000000e+00> : vector<4x8x8xf32>
    %23 = tpu.matmul %22, %20, %cst_12 {dimension_numbers = #tpu.dot_dimension_numbers<[2], [2], [1], [1], [0, 0, 0, 1, 1, 1], [0], [0]>} : vector<4x8x8xf32>, vector<4x8x8xf32>, vector<4x8x8xf32> -> vector<4x8x8xf32>
    "tpu.trace_stop"() : () -> ()
    %cst_13 = arith.constant dense<0xFF800000> : vector<4x8xf32>
    %24 = vector.multi_reduction <maximumf>, %23, %cst_13 [2] : vector<4x8x8xf32> to vector<4x8xf32>
    %25 = vector.shape_cast %24 : vector<4x8xf32> to vector<4x8x1xf32>
    %26 = vector.broadcast %25 : vector<4x8x1xf32> to vector<4x8x8xf32>
    %27 = arith.subf %23, %26 : vector<4x8x8xf32>
    %28 = math.exp %27 : vector<4x8x8xf32>
    %cst_14 = arith.constant dense<0.000000e+00> : vector<4x8xf32>
    %29 = vector.multi_reduction <add>, %28, %cst_14 [2] : vector<4x8x8xf32> to vector<4x8xf32>
    %30 = vector.shape_cast %29 : vector<4x8xf32> to vector<4x8x1xf32>
    %31 = tpu.reciprocal %30 {approx = true} : vector<4x8x1xf32> -> vector<4x8x1xf32>
    %32 = vector.broadcast %31 : vector<4x8x1xf32> to vector<4x8x8xf32>
    %33 = arith.mulf %28, %32 : vector<4x8x8xf32>
    "tpu.trace_start"() <{level = 10 : i32, message = "bqk,bkd->bqd"}> : () -> ()
    %cst_15 = arith.constant dense<0.000000e+00> : vector<4x8x8xf32>
    %34 = tpu.matmul %33, %20, %cst_15 {dimension_numbers = #tpu.dot_dimension_numbers<[2], [1], [1], [2], [0, 0, 0, 1, 1, 2], [0], [0]>} : vector<4x8x8xf32>, vector<4x8x8xf32>, vector<4x8x8xf32> -> vector<4x8x8xf32>
    "tpu.trace_stop"() : () -> ()
    %35 = vector.shape_cast %34 : vector<4x8x8xf32> to vector<1x4x8x8xf32>
    %36 = vector.extract_strided_slice %35 {offsets = [0, 0, 0, 0], sizes = [1, 1, 8, 8], strides = [1, 1, 1, 1]} : vector<1x4x8x8xf32> to vector<1x1x8x8xf32>
    %37 = vector.shape_cast %36 : vector<1x1x8x8xf32> to vector<1x8x8xf32>
    %38 = vector.extract_strided_slice %35 {offsets = [0, 1, 0, 0], sizes = [1, 1, 8, 8], strides = [1, 1, 1, 1]} : vector<1x4x8x8xf32> to vector<1x1x8x8xf32>
    %39 = vector.shape_cast %38 : vector<1x1x8x8xf32> to vector<1x8x8xf32>
    %40 = vector.extract_strided_slice %35 {offsets = [0, 2, 0, 0], sizes = [1, 1, 8, 8], strides = [1, 1, 1, 1]} : vector<1x4x8x8xf32> to vector<1x1x8x8xf32>
    %41 = vector.shape_cast %40 : vector<1x1x8x8xf32> to vector<1x8x8xf32>
    %42 = vector.extract_strided_slice %35 {offsets = [0, 3, 0, 0], sizes = [1, 1, 8, 8], strides = [1, 1, 1, 1]} : vector<1x4x8x8xf32> to vector<1x1x8x8xf32>
    %43 = vector.shape_cast %42 : vector<1x1x8x8xf32> to vector<1x8x8xf32>
    %44 = tpu.concatenate %37, %39, %41, %43 in 2 : vector<1x8x8xf32>, vector<1x8x8xf32>, vector<1x8x8xf32>, vector<1x8x8xf32> -> vector<1x8x32xf32>
    %45 = vector.shape_cast %44 : vector<1x8x32xf32> to vector<8x32xf32>
    %c0_16 = arith.constant 0 : index
    %c0_17 = arith.constant 0 : index
    %46 = vector.load %arg3[%c0_16, %c0_17] : memref<32x32xf32, #tpu.memory_space<vmem>>, vector<32x32xf32>
    %cst_18 = arith.constant dense<0.000000e+00> : vector<8x32xf32>
    %47 = tpu.matmul %45, %46, %cst_18 {dimension_numbers = #tpu.dot_dimension_numbers<[1], [0], [0], [1], [0, 0, 1, 1], [], []>} : vector<8x32xf32>, vector<32x32xf32>, vector<8x32xf32> -> vector<8x32xf32>
    %48 = arith.addf %1, %47 : vector<8x32xf32>
    %cst_19 = arith.constant dense<0.000000e+00> : vector<8xf32>
    %49 = vector.multi_reduction <add>, %48, %cst_19 [1] : vector<8x32xf32> to vector<8xf32>
    %50 = vector.shape_cast %49 : vector<8xf32> to vector<8x1xf32>
    %cst_20 = arith.constant 3.200000e+01 : f32
    %51 = vector.broadcast %cst_20 : f32 to vector<8x1xf32>
    %52 = arith.divf %50, %51 : vector<8x1xf32>
    %53 = vector.broadcast %52 : vector<8x1xf32> to vector<8x32xf32>
    %54 = arith.subf %48, %53 : vector<8x32xf32>
    %55 = arith.mulf %54, %54 : vector<8x32xf32>
    %cst_21 = arith.constant dense<0.000000e+00> : vector<8xf32>
    %56 = vector.multi_reduction <add>, %55, %cst_21 [1] : vector<8x32xf32> to vector<8xf32>
    %57 = vector.shape_cast %56 : vector<8xf32> to vector<8x1xf32>
    %cst_22 = arith.constant 3.200000e+01 : f32
    %58 = vector.broadcast %cst_22 : f32 to vector<8x1xf32>
    %59 = arith.divf %57, %58 : vector<8x1xf32>
    %60 = vector.broadcast %52 : vector<8x1xf32> to vector<8x32xf32>
    %61 = arith.subf %48, %60 : vector<8x32xf32>
    %cst_23 = arith.constant 9.99999974E-6 : f32
    %62 = vector.broadcast %cst_23 : f32 to vector<8x1xf32>
    %63 = arith.addf %59, %62 : vector<8x1xf32>
    %64 = math.rsqrt %63 : vector<8x1xf32>
    %65 = vector.broadcast %64 : vector<8x1xf32> to vector<8x32xf32>
    %66 = arith.mulf %61, %65 : vector<8x32xf32>
    %67 = vector.broadcast %4 : vector<1x32xf32> to vector<8x32xf32>
    %68 = arith.mulf %66, %67 : vector<8x32xf32>
    %69 = vector.broadcast %5 : vector<1x32xf32> to vector<8x32xf32>
    %70 = arith.addf %68, %69 : vector<8x32xf32>
    %c0_24 = arith.constant 0 : index
    %c0_25 = arith.constant 0 : index
    %71 = vector.load %arg4[%c0_24, %c0_25] : memref<32x64xf32, #tpu.memory_space<vmem>>, vector<32x64xf32>
    %cst_26 = arith.constant dense<0.000000e+00> : vector<8x64xf32>
    %72 = tpu.matmul %70, %71, %cst_26 {dimension_numbers = #tpu.dot_dimension_numbers<[1], [0], [0], [1], [0, 0, 1, 1], [], []>} : vector<8x32xf32>, vector<32x64xf32>, vector<8x64xf32> -> vector<8x64xf32>
    %73 = vector.broadcast %2 : vector<1x64xf32> to vector<8x64xf32>
    %74 = arith.addf %72, %73 : vector<8x64xf32>
    %cst_27 = arith.constant 0.000000e+00 : f32
    %75 = vector.broadcast %cst_27 : f32 to vector<8x64xf32>
    %76 = arith.maximumf %74, %75 : vector<8x64xf32>
    %c0_28 = arith.constant 0 : index
    %c0_29 = arith.constant 0 : index
    %77 = vector.load %arg5[%c0_28, %c0_29] : memref<64x32xf32, #tpu.memory_space<vmem>>, vector<64x32xf32>
    %cst_30 = arith.constant dense<0.000000e+00> : vector<8x32xf32>
    %78 = tpu.matmul %76, %77, %cst_30 {dimension_numbers = #tpu.dot_dimension_numbers<[1], [0], [0], [1], [0, 0, 1, 1], [], []>} : vector<8x64xf32>, vector<64x32xf32>, vector<8x32xf32> -> vector<8x32xf32>
    %79 = vector.broadcast %3 : vector<1x32xf32> to vector<8x32xf32>
    %80 = arith.addf %78, %79 : vector<8x32xf32>
    %81 = arith.addf %80, %70 : vector<8x32xf32>
    %cst_31 = arith.constant dense<0.000000e+00> : vector<8xf32>
    %82 = vector.multi_reduction <add>, %81, %cst_31 [1] : vector<8x32xf32> to vector<8xf32>
    %83 = vector.shape_cast %82 : vector<8xf32> to vector<8x1xf32>
    %cst_32 = arith.constant 3.200000e+01 : f32
    %84 = vector.broadcast %cst_32 : f32 to vector<8x1xf32>
    %85 = arith.divf %83, %84 : vector<8x1xf32>
    %86 = vector.broadcast %85 : vector<8x1xf32> to vector<8x32xf32>
    %87 = arith.subf %81, %86 : vector<8x32xf32>
    %88 = arith.mulf %87, %87 : vector<8x32xf32>
    %cst_33 = arith.constant dense<0.000000e+00> : vector<8xf32>
    %89 = vector.multi_reduction <add>, %88, %cst_33 [1] : vector<8x32xf32> to vector<8xf32>
    %90 = vector.shape_cast %89 : vector<8xf32> to vector<8x1xf32>
    %cst_34 = arith.constant 3.200000e+01 : f32
    %91 = vector.broadcast %cst_34 : f32 to vector<8x1xf32>
    %92 = arith.divf %90, %91 : vector<8x1xf32>
    %93 = vector.broadcast %85 : vector<8x1xf32> to vector<8x32xf32>
    %94 = arith.subf %81, %93 : vector<8x32xf32>
    %cst_35 = arith.constant 9.99999974E-6 : f32
    %95 = vector.broadcast %cst_35 : f32 to vector<8x1xf32>
    %96 = arith.addf %92, %95 : vector<8x1xf32>
    %97 = math.rsqrt %96 : vector<8x1xf32>
    %98 = vector.broadcast %97 : vector<8x1xf32> to vector<8x32xf32>
    %99 = arith.mulf %94, %98 : vector<8x32xf32>
    %100 = vector.broadcast %6 : vector<1x32xf32> to vector<8x32xf32>
    %101 = arith.mulf %99, %100 : vector<8x32xf32>
    %102 = vector.broadcast %7 : vector<1x32xf32> to vector<8x32xf32>
    %103 = arith.addf %101, %102 : vector<8x32xf32>
    %104 = vector.shape_cast %103 : vector<8x32xf32> to vector<1x8x32xf32>
    %105 = vector.extract_strided_slice %104 {offsets = [0, 0, 0], sizes = [1, 1, 32], strides = [1, 1, 1]} : vector<1x8x32xf32> to vector<1x1x32xf32>
    %106 = vector.shape_cast %105 : vector<1x1x32xf32> to vector<1x32xf32>
    %107 = vector.extract_strided_slice %104 {offsets = [0, 1, 0], sizes = [1, 1, 32], strides = [1, 1, 1]} : vector<1x8x32xf32> to vector<1x1x32xf32>
    %108 = vector.shape_cast %107 : vector<1x1x32xf32> to vector<1x32xf32>
    %109 = vector.extract_strided_slice %104 {offsets = [0, 2, 0], sizes = [1, 1, 32], strides = [1, 1, 1]} : vector<1x8x32xf32> to vector<1x1x32xf32>
    %110 = vector.shape_cast %109 : vector<1x1x32xf32> to vector<1x32xf32>
    %111 = vector.extract_strided_slice %104 {offsets = [0, 3, 0], sizes = [1, 1, 32], strides = [1, 1, 1]} : vector<1x8x32xf32> to vector<1x1x32xf32>
    %112 = vector.shape_cast %111 : vector<1x1x32xf32> to vector<1x32xf32>
    %113 = vector.extract_strided_slice %104 {offsets = [0, 4, 0], sizes = [1, 1, 32], strides = [1, 1, 1]} : vector<1x8x32xf32> to vector<1x1x32xf32>
    %114 = vector.shape_cast %113 : vector<1x1x32xf32> to vector<1x32xf32>
    %115 = vector.extract_strided_slice %104 {offsets = [0, 5, 0], sizes = [1, 1, 32], strides = [1, 1, 1]} : vector<1x8x32xf32> to vector<1x1x32xf32>
    %116 = vector.shape_cast %115 : vector<1x1x32xf32> to vector<1x32xf32>
    %117 = vector.extract_strided_slice %104 {offsets = [0, 6, 0], sizes = [1, 1, 32], strides = [1, 1, 1]} : vector<1x8x32xf32> to vector<1x1x32xf32>
    %118 = vector.shape_cast %117 : vector<1x1x32xf32> to vector<1x32xf32>
    %119 = vector.extract_strided_slice %104 {offsets = [0, 7, 0], sizes = [1, 1, 32], strides = [1, 1, 1]} : vector<1x8x32xf32> to vector<1x1x32xf32>
    %120 = vector.shape_cast %119 : vector<1x1x32xf32> to vector<1x32xf32>
    %121 = tpu.concatenate %106, %108, %110, %112, %114, %116, %118, %120 in 1 : vector<1x32xf32>, vector<1x32xf32>, vector<1x32xf32>, vector<1x32xf32>, vector<1x32xf32>, vector<1x32xf32>, vector<1x32xf32>, vector<1x32xf32> -> vector<1x256xf32>
    %c0_36 = arith.constant 0 : index
    %c0_37 = arith.constant 0 : index
    %c0_38 = arith.constant 0 : index
    %122 = vector.load %arg7[%c0_36, %c0_37, %c0_38] : memref<1x1x256xf32, #tpu.memory_space<vmem>>, vector<1x1x256xf32>
    %123 = vector.shape_cast %122 : vector<1x1x256xf32> to vector<1x256xf32>
    %124 = vector.shape_cast %121 : vector<1x256xf32> to vector<1x1x256xf32>
    tpu.vector_store %arg7[%c0_36, %c0_37, %c0_38], %124 {strides = array<i32>} : memref<1x1x256xf32, #tpu.memory_space<vmem>>, vector<1x1x256xf32>,
    return
  }
  func.func @transform_0(%arg0: i32) -> (i32, i32, i32) {
    %c0_i32 = arith.constant 0 : i32
    %c0_i32_0 = arith.constant 0 : i32
    %c0_i32_1 = arith.constant 0 : i32
    return %arg0, %c0_i32, %c0_i32_0 : i32, i32, i32
  }
  func.func @transform_1(%arg0: i32) -> (i32, i32) {
    %c0_i32 = arith.constant 0 : i32
    %c0_i32_0 = arith.constant 0 : i32
    %c0_i32_1 = arith.constant 0 : i32
    return %c0_i32, %c0_i32_0 : i32, i32
  }
  func.func @transform_2(%arg0: i32) -> (i32, i32) {
    %c0_i32 = arith.constant 0 : i32
    %c0_i32_0 = arith.constant 0 : i32
    %c0_i32_1 = arith.constant 0 : i32
    return %c0_i32, %c0_i32_0 : i32, i32
  }
  func.func @transform_3(%arg0: i32) -> (i32, i32) {
    %c0_i32 = arith.constant 0 : i32
    %c0_i32_0 = arith.constant 0 : i32
    %c0_i32_1 = arith.constant 0 : i32
    return %c0_i32, %c0_i32_0 : i32, i32
  }
  func.func @transform_4(%arg0: i32) -> (i32, i32) {
    %c0_i32 = arith.constant 0 : i32
    %c0_i32_0 = arith.constant 0 : i32
    %c0_i32_1 = arith.constant 0 : i32
    return %c0_i32, %c0_i32_0 : i32, i32
  }
  func.func @transform_5(%arg0: i32) -> (i32, i32) {
    %c0_i32 = arith.constant 0 : i32
    %c0_i32_0 = arith.constant 0 : i32
    %c0_i32_1 = arith.constant 0 : i32
    return %c0_i32, %c0_i32_0 : i32, i32
  }
  func.func @transform_6(%arg0: i32) -> (i32, i32, i32) {
    %c0_i32 = arith.constant 0 : i32
    %c0_i32_0 = arith.constant 0 : i32
    %c0_i32_1 = arith.constant 0 : i32
    return %arg0, %c0_i32, %c0_i32_0 : i32, i32, i32
  }
}

</mosaic_0001>

<bundles_post_ra>
// kernel: tpu_custom_call.1
= control target key start
LH: loop header
LB: loop body
LE: loop exit
PB: predicated region body
PF: predicated region fallthrough
CT: control target
= control target key end

     0   :  { %11 = vsyncpa [#allocation3], 0  ;;  %s2210_s0 = inlined_call_operand.hbm [shape: f32[2,8,32], index: 0, kind: input, shape index: {}]   ;;  %s2211_s1 = inlined_call_operand.vmem [shape: f32[32,32], index: 1, kind: input, shape index: {}]   ;;  %s2212_s2 = inlined_call_operand.vmem [shape: f32[32,32], index: 2, kind: input, shape index: {}]   ;;  %s2213_s3 = inlined_call_operand.vmem [shape: f32[32,64], index: 3, kind: input, shape index: {}]   ;;  %s2214_s4 = inlined_call_operand.vmem [shape: f32[64,32], index: 4, kind: input, shape index: {}]   ;;  %s2215_s5 = inlined_call_operand.vmem [shape: f32[8,128], index: 5, kind: input, shape index: {}]   ;;  %s2216_s6 = inlined_call_operand.hbm [shape: f32[2,1,256], index: 6, kind: output, shape index: {}]  }
   0x1   :  { %13 = vsyncpa [#allocation3 + $0x1], 0 }
   0x2   :  { %14 = vsyncpa [#allocation4], 0 }
   0x3   :  { %16 = vsyncpa [#allocation4 + $0x1], 0  ;;  %s1881_s21 = smov 0   ;;  %s1883_s22 = smov 0  }
   0x4   :  { %s1885_s23 = smov 0   ;;  %s1887_s24 = smov 0  }
   0x5 LB: > { %s1902_s25 = sadd.s32 4294967295, %s1829_s24   ;;  %s1456_s26 = sadd.s32 4294967294, %s1829_s24   ;;  %s1829_s24 = sphi %s1887_s24, %s2231_s24   ;;  %s1825_s23 = sphi %s1885_s23, %s2230_s23   ;;  %s1821_s22 = sphi %s1883_s22, %s2229_s22   ;;  %s1817_s21 = sphi %s1881_s21, %s2228_s21  }
   0x6   : > { %s1906_s27 = sadd.s32 1, %s1829_s24   ;;  %s29_s28 = sadd.s32 1, %s1825_s23 }
   0x7   : > { %s26_s29 = ssub.s32 %s1829_s24, %s1906_s27  ;;  %p36_p0 = scmp.ne.s32.totalorder %s1825_s23, %s1821_s22 }
   0x8   : > { %p27_p1 = scmp.eq.s32.totalorder %s26_s29, 0  ;;  %p37_p2 = scmp.eq.s32.totalorder %s1829_s24, 0 }
   0x9   : > { %p42_p3 = scmp.ne.s32.totalorder %s1821_s22, %s1817_s21  ;;  %p43_p4 = scmp.eq.s32.totalorder %s1902_s25, 0 }
   0xa   : > { %s1918_s30 = scalar_select %p27_p1, %s1825_s23, %s29_s28  }
   0xb   : > { %p1920_p5 = por %p37_p2, %p36_p0  ;;  %p1924_p6 = por %p43_p4, %p42_p3 }
   0xc   : > { %p171_p7 = scmp.eq.s32.totalorder %s1902_s25, 1  ;;  %p177_p8 = scmp.eq.s32.totalorder %s1456_s26, 1 }
   0xd   : > { %p1666_p10 = scmp.lt.s32.totalorder %s1829_s24, 2  ;;  %s212_s11 = sand.u32 1, %s1825_s23  }
   0xe   : > { %p1931_p11 = por %p171_p7, %p36_p0  ;;  %p1935_p12 = por %p177_p8, %p42_p3 }
   0xf   : > { %s1460_s12 = sshll.u32 %s1829_s24, 7  ;;  %s1459_s13 = sshll.u32 %s212_s11, 3 }
  0x10   : > { %s2220_s9 = scalar_select %p1931_p11, 1, 0 }
  0x11   : > { %s2221_s10 = scalar_select %p1935_p12, 1, 0 }
  0x12   : > { %s1944_s16 = scalar_lea.hbm %s2210_s0, %s1460_s12  ;;  %s216_s17 = scalar_lea.vmem [#allocation2], %s1459_s13 }
  0x13   : > { %s223_s18 = sshll.u32 %s216_s17, 4  ;;  %p1948_p13 = pnand %p1666_p10, %p1920_p5  ;;  %s1952_s18 = int_to_ptr.vmem [resolvable:$true] %s223_s18 }
  0x14   : > { %s213_s20 = scalar_lea.sflag [#allocation3], %s212_s11  ;;  %s1733_s26 = scalar_lea.hbm %s1944_s16, 128 }
  0x15   : > { %p1734_p2 = scmp.ne.s32.totalorder %s1944_s16, %s1733_s26  ;;  %p1735_p3 = pneg %p1948_p13 }
  0x16   : > { %s1738_s7 = scalar_lea.hbm %s2210_s0, 256  ;;  %p1739_p5 = scmp.lt.u32.totalorder %s1944_s16, %s2210_s0 }
  0x17   : > { %p1736_p4 = pnand %p1735_p3, %p1734_p2  ;;  %p1740_p8 = scmp.lt.u32.totalorder %s1738_s7, %s1733_s26 }
  0x18   : > { %p1742_p9 = scmp.lt.u32.totalorder %s1733_s26, %s1944_s16 }
  0x19   : > { %p1737_p7 = pneg %p1736_p4  ;;  %p1741_p10 = por %p1740_p8, %p1739_p5 }
  0x1b   : > { %p1743_p0 = por %p1742_p9, %p1741_p10 }
  0x1d   : > { %p1744_p1 = pnand %p1743_p0, %p1737_p7 }
  0x1f   : > { %1747 = shalt.err (!%p1744_p1)
}
  0x20   : > { %s1748_s11 = scalar_lea.vmem %s1952_s18, 128  ;;  %s1831_s14 = smov [#allocation2]  }
  0x21   : > { %p1749_p2 = scmp.ne.s32.totalorder %s1952_s18, %s1748_s11  ;;  %s1753_s15 = sshll.u32 %s1831_s14, 4  ;;  %s1754_s15 = int_to_ptr.vmem [resolvable:$false] %s1753_s15 }
  0x22   : > { %s1755_s17 = scalar_lea.vmem %s1754_s15, 256  ;;  %p1756_p11 = scmp.lt.s32.totalorder %s1952_s18, %s1754_s15 }
  0x23   : > { %p1751_p4 = pnand %p1749_p2, %p1735_p3  ;;  %p1757_p5 = scmp.lt.s32.totalorder %s1755_s17, %s1748_s11 }
  0x25   : > { %p1752_p12 = pneg %p1751_p4  ;;  %p1758_p8 = por %p1757_p5, %p1756_p11 }
  0x27   : > { %p1759_p9 = pnand %p1758_p8, %p1752_p12 }
  0x29   : > { %1762 = shalt.err (!%p1759_p9)
}
  0x2a   : > { %1661 = dma.hbm_to_vmem [thread:$0]  (!%p1948_p13), %s1944_s16, 128, %s1952_s18, %s213_s20  }
  0x2b   : > { %p2223_p0 = scmp.lt.s32.totalorder %s1829_s24, 3  ;;  %p2224_p1 = scmp.ge.s32.totalorder %s1829_s24, 1 }
  0x2d   : > { %p229_p3 = pnand %p2224_p1, %p2223_p0 }
  0x2e   : > { %s1986_s26 = sand.u32 (!%p229_p3), 1, %s1821_s22  }
  0x2f   : > { %232 = sbr.rel (%p229_p3) target bundleno = 2679 (0xa77), region = 44  ;;  %s1462_s28 = sshll.u32 (!%p229_p3), %s1986_s26, 3 }
  0x30   : > { %s235_s29 = scalar_lea.sflag (!%p229_p3), [#allocation3], %s1986_s26  ;;  %s238_s7 = scalar_lea.vmem (!%p229_p3), [#allocation2], %s1462_s28 }
  0x36   : > { %1808 = dma.done.wait (%p1924_p6), %s235_s29, 128  }
  0x37   : > { %1810 = vsyncadd (%p1924_p6), %s235_s29, 4294967168  ;;  %v1832_v0 = vmov 0.0|0.0   ;;  %vm1833_vm0 = vmmov 0   ;;  %v1834_v1 = vmov 0.0   ;;  %v274_v2 = vld [vmem:[%s2211_s1] sm:$0xff]  ;;  %v275_v3 = vld [vmem:[%s2211_s1 + $0x8] sm:$0xff] }
  0x38   : > { %1624 = vmatprep.subr.bf16.mxu1 %v1832_v0  ;;  %1540 = vmatprep.mubr.msk.f32.mxu1 %vm1833_vm0, %v1834_v1  ;;  %v276_v4 = vld [vmem:[%s2211_s1 + $0x10] sm:$0xff]  ;;  %v1625_v5 = vpack.c.bf16 %v275_v3, %v274_v2  ;;  %v277_v6 = vld [vmem:[%s2211_s1 + $0x18] sm:$0xff]  ;;  %v2013_v8 = vld [vmem:[%s238_s7] sm:$0xff]  ;;  %vm278_vm1 = vcmask 261120   ;;  %vm366_vm2 = vcmask 64512   ;;  %s1835_s14 = smov 104  }
  0x39   : > { %1553 = vmatprep.subr.mxu0 %v1834_v1  ;;  %1555 = vmatprep.mubr.msk.f32.mxu0 %vm1833_vm0, %v1834_v1  ;;  %v1628_v7 = vpack.c.bf16 %v277_v6, %v276_v4  ;;  %s1836_s15 = smov 120   ;;  %s1837_s17 = smov 112   ;;  %v1020_v2 = vld [vmem:[%s2212_s2] sm:$0xff]  ;;  %v1021_v3 = vld [vmem:[%s2212_s2 + $0x8] sm:$0xff]  ;;  %v1023_v6 = vld [vmem:[%s2212_s2 + $0x18] sm:$0xff]  ;;  %vm1016_vm3 = vcmask 130048  }
  0x3a   : > { %1626 = vmatpush3.bf16.msra.mxu1 %v1625_v5  ;;  %v1631_v4 = vpack.c.bf16 %v1021_v3, %v1020_v2  ;;  %v1022_v5 = vld [vmem:[%s2212_s2 + $0x10] sm:$0xff]  ;;  %s1838_s12 = smov 8   ;;  %s1839_s13 = smov 16   ;;  %vm1018_vm4 = vcmask 195584   ;;  %vm1216_vm5 = vcmask 523264   ;;  %vm1343_vm6 = vcmask 785408  }
  0x3b   : > { %1627 = vmatprep.subr.bf16.mxu1 %v1832_v0  ;;  %s1840_s11 = smov 24   ;;  %s1841_s19 = smov 32  }
  0x3c   : > { %s1842_s8 = smov 96   ;;  %s1843_s20 = smov 64  }
  0x3d   : > { %s1372_s29 = scalar_lea.sflag [#allocation4], %s1986_s26  ;;  %p2225_p11 = scmp.ne.s32.totalorder %s2220_s9, 0 }
  0x3e   : > { %1629 = vmatpush3.bf16.msra.mxu1 %v1628_v7  ;;  %v1634_v7 = vpack.c.bf16 %v1023_v6, %v1022_v5 }
  0x3f   : > { %1543 = vmatprep.subr.mxu1 %v1834_v1 }
  0x41   : > { %1541 = vmatmul.mubr.msk.f32.vlgmr.msra.gmra.mrb[0].mxu1 %vm278_vm1, %v2013_v8 }
  0x42   : > { %1545 = vmatprep.mubr.msk.f32.mxu1 %vm1833_vm0, %v1834_v1 }
 0x114   : > { %v348_v9 = vpop.f32.mrb[0].mxu1 }
 0x115   : > { %v362_v10 = vmul.f32 0.17677669, %v348_v9  ;;  %359 = vrot.lane.b32.xlu1 %v348_v9, %s1835_s14  ;;  %353 = vrot.lane.b32.xlu0 %v348_v9, %s1836_s15  ;;  %v1542_v11 = vpop.f32.mrb[1].mxu1 }
 0x116   : > { %1544 = vmatpush3.xpose.msk.msra.mxu1 %vm366_vm2, %v348_v9 }
 0x117   : > { %1548 = vmatprep.subr.mxu1 %v1834_v1 }
 0x119   : > { %1546 = vmatmul.mubr.msk.f32.vlgmr.msra.gmra.mrb[2].mxu1 %vm366_vm2, %v362_v10  ;;  %356 = vrot.lane.b32.xlu0 %v348_v9, %s1837_s17 }
 0x11a   : > { %1550 = vmatprep.mubr.msk.f32.mxu1 %vm1833_vm0, %v1834_v1 }
 0x187   : > { %v354_v12 = vpop.permute.xlu0 %353  ;;  %v2027_v14 = vpop.permute.xlu1 %359 }
 0x188   : > { %v363_v13 = vmul.f32 0.17677669, %v354_v12  ;;  %1549 = vmatpush3.xpose.msk.msra.mxu1 %vm366_vm2, %v354_v12  ;;  %v365_v17 = vmul.f32 0.17677669, %v2027_v14 }
 0x189   : > { %1558 = vmatprep.subr.mxu1 %v1834_v1 }
 0x18b   : > { %v2029_v15 = vpop.permute.xlu0 %356  ;;  %1551 = vmatmul.mubr.msk.f32.vlgmr.msra.gmra.mrb[4].mxu1 %vm366_vm2, %v363_v13 }
 0x18c   : > { %v364_v16 = vmul.f32 0.17677669, %v2029_v15  ;;  %1554 = vmatpush3.xpose.msk.msra.mxu0 %vm366_vm2, %v2029_v15  ;;  %1559 = vmatpush3.xpose.msk.msra.mxu1 %vm366_vm2, %v2027_v14 }
 0x18d   : > { %1560 = vmatprep.mubr.msk.f32.mxu1 %vm1833_vm0, %v1834_v1  ;;  %1563 = vmatprep.subr.mxu0 %v1834_v1 }
 0x18e   : > { %1568 = vmatprep.subr.mxu1 %v1834_v1 }
 0x18f   : > { %1556 = vmatmul.mubr.msk.f32.vlgmr.msra.gmra.mrb[0].mxu0 %vm366_vm2, %v364_v16  ;;  %1561 = vmatmul.mubr.msk.f32.vlgmr.msra.gmra.mrb[6].mxu1 %vm366_vm2, %v365_v17 }
 0x190   : > { %1564 = vmatpush3.msra.mxu0 %v348_v9  ;;  %1569 = vmatpush3.msra.mxu1 %v354_v12 }
 0x191   : > { %1565 = vmatprep.mubr.msk.f32.mxu0 %vm1833_vm0, %v1834_v1  ;;  %1573 = vmatprep.subr.mxu0 %v1834_v1 }
 0x192   : > { %1570 = vmatprep.mubr.msk.f32.mxu1 %vm1833_vm0, %v1834_v1  ;;  %1578 = vmatprep.subr.mxu1 %v1834_v1 }
 0x1ec   : > { %v438_v18 = vpop.f32.mrb[2].mxu1 }
 0x1ed   : > { %v1547_v19 = vpop.f32.mrb[3].mxu1  ;;  %v667_v20 = vsel %vm366_vm2, %v438_v18, -inf }
 0x1ee   : > { %668 = vmax.xlane.f32.xlu1 %v667_v20 }
 0x25e   : > { %v513_v21 = vpop.f32.mrb[4].mxu1 }
 0x25f   : > { %v1552_v22 = vpop.f32.mrb[5].mxu1  ;;  %v670_v23 = vsel %vm366_vm2, %v513_v21, -inf }
 0x260   : > { %671 = vmax.xlane.f32.xlu0 %v670_v23 }
 0x262   : > { %v588_v24 = vpop.f32.mrb[0].mxu0  ;;  %v663_v25 = vpop.f32.mrb[6].mxu1 }
 0x263   : > { %v1557_v26 = vpop.f32.mrb[1].mxu0  ;;  %v1562_v27 = vpop.f32.mrb[7].mxu1  ;;  %v673_v28 = vsel %vm366_vm2, %v588_v24, -inf  ;;  %v676_v29 = vsel %vm366_vm2, %v663_v25, -inf }
 0x264   : > { %674 = vmax.xlane.f32.xlu0 %v673_v28  ;;  %677 = vmax.xlane.f32.xlu1 %v676_v29 }
 0x27b   : > { %v669_v30 = vpop.xlane.xlu1 %668 }
 0x27c   : > { %v679_v31 = vsub.f32 %v438_v18, %v669_v30  ;;  %v1122_v30 = vld [vmem:[%s2213_s3] sm:$0xff] }
 0x27e   : > { %v683_v32 = vmul.f32 1.442695, %v679_v31  ;;  %v1124_v31 = vld [vmem:[%s2213_s3 + $0x10] sm:$0xff] }
 0x280   : > { %1713 = vpow2.f32 %v683_v32  ;;  %v1125_v32 = vld [vmem:[%s2213_s3 + $0x18] sm:$0xff] }
 0x28a   : > { %v1714_v33 = vpop.eup %1713 }
 0x28b   : > { %v691_v34 = vsel %vm366_vm2, %v1714_v33, 0.0 }
 0x28c   : > { %692 = vadd.xlane.f32.xlu0 %v691_v34  ;;  %v1204_v34 = vld [vmem:[%s2214_s4] sm:$0xff] }
 0x2ed   : > { %v672_v35 = vpop.xlane.xlu0 %671 }
 0x2ee   : > { %v680_v36 = vsub.f32 %v513_v21, %v672_v35  ;;  %v1205_v35 = vld [vmem:[%s2214_s4 + $0x8] sm:$0xff] }
 0x2f0   : > { %v685_v37 = vmul.f32 1.442695, %v680_v36  ;;  %v1206_v36 = vld [vmem:[%s2214_s4 + $0x10] sm:$0xff] }
 0x2f1   : > { %v675_v38 = vpop.xlane.xlu0 %674  ;;  %v678_v39 = vpop.xlane.xlu1 %677 }
 0x2f2   : > { %1715 = vpow2.f32 %v685_v37  ;;  %v681_v40 = vsub.f32 %v588_v24, %v675_v38  ;;  %v682_v41 = vsub.f32 %v663_v25, %v678_v39  ;;  %v1643_v37 = vpack.c.bf16 %v1205_v35, %v1204_v34  ;;  %v1207_v38 = vld [vmem:[%s2214_s4 + $0x18] sm:$0xff] }
 0x2f3   : > { %v1646_v39 = vpack.c.bf16 %v1207_v38, %v1206_v36 }
 0x2f4   : > { %v687_v42 = vmul.f32 1.442695, %v681_v40  ;;  %v689_v43 = vmul.f32 1.442695, %v682_v41  ;;  %v1208_v40 = vld [vmem:[%s2214_s4 + $0x20] sm:$0xff]  ;;  %v1209_v41 = vld [vmem:[%s2214_s4 + $0x28] sm:$0xff] }
 0x2f6   : > { %1717 = vpow2.f32 %v687_v42  ;;  %v1649_v42 = vpack.c.bf16 %v1209_v41, %v1208_v40 }
 0x2f7   : > { %1719 = vpow2.f32 %v689_v43 }
 0x2fc   : > { %v1716_v44 = vpop.eup %1715 }
 0x2fd   : > { %v694_v45 = vsel %vm366_vm2, %v1716_v44, 0.0 }
 0x2fe   : > { %695 = vadd.xlane.f32.xlu1 %v694_v45 }
 0x300   : > { %v1718_v46 = vpop.eup %1717 }
 0x301   : > { %v1720_v47 = vpop.eup %1719  ;;  %v697_v48 = vsel %vm366_vm2, %v1718_v46, 0.0 }
 0x302   : > { %698 = vadd.xlane.f32.xlu0 %v697_v48  ;;  %v700_v49 = vsel %vm366_vm2, %v1720_v47, 0.0 }
 0x303   : > { %701 = vadd.xlane.f32.xlu1 %v700_v49  ;;  %v1479_v49 = vld [vmem:[%s2215_s5 + $0x3] ss:$0 sm:$0xff] }
 0x319   : > { %v693_v50 = vpop.xlane.xlu0 %692 }
 0x31a   : > { %1721 = vrcp.f32 %v693_v50 }
 0x324   : > { %v1722_v51 = vpop.eup %1721 }
 0x325   : > { %v707_v52 = vmul.f32 %v1722_v51, %v1714_v33  ;;  %v1640_v33 = vpack.c.bf16 %v1125_v32, %v1124_v31 }
 0x327   : > { %1566 = vmatmul.mubr.msk.f32.vlgmr.msra.gmra.mrb[2].mxu0 %vm366_vm2, %v707_v52  ;;  %v1211_v52 = vld [vmem:[%s2214_s4 + $0x38] sm:$0xff] }
 0x328   : > { %1574 = vmatpush3.msra.mxu0 %v2029_v15  ;;  %1575 = vmatprep.mubr.msk.f32.mxu0 %vm1833_vm0, %v1834_v1 }
 0x329   : > { %1630 = vmatprep.subr.bf16.mxu0 %v1832_v0 }
 0x38b   : > { %v696_v53 = vpop.xlane.xlu1 %695 }
 0x38c   : > { %1723 = vrcp.f32 %v696_v53 }
 0x38f   : > { %v699_v54 = vpop.xlane.xlu0 %698 }
 0x390   : > { %1725 = vrcp.f32 %v699_v54  ;;  %v702_v55 = vpop.xlane.xlu1 %701  ;;  %v1480_v54 = vld [vmem:[%s2215_s5] ss:$0 sm:$0xff] }
 0x391   : > { %1727 = vrcp.f32 %v702_v55 }
 0x396   : > { %v1724_v56 = vpop.eup %1723 }
 0x397   : > { %v708_v57 = vmul.f32 %v1724_v56, %v1716_v44 }
 0x399   : > { %1571 = vmatmul.mubr.msk.f32.vlgmr.msra.gmra.mrb[8].mxu1 %vm366_vm2, %v708_v57 }
 0x39a   : > { %v1726_v58 = vpop.eup %1725  ;;  %1579 = vmatpush3.msra.mxu1 %v2027_v14  ;;  %1580 = vmatprep.mubr.msk.f32.mxu1 %vm1833_vm0, %v1834_v1 }
 0x39b   : > { %v1728_v59 = vpop.eup %1727  ;;  %v709_v60 = vmul.f32 %v1726_v58, %v1718_v46  ;;  %1636 = vmatprep.subr.bf16.mxu1 %v1832_v0 }
 0x39c   : > { %v710_v61 = vmul.f32 %v1728_v59, %v1720_v47  ;;  %v1478_v47 = vld [vmem:[%s2215_s5 + $0x2] ss:$0 sm:$0xff]  ;;  %v1482_v59 = vld [vmem:[%s2215_s5 + $0x1] ss:$0 sm:$0xff] }
 0x39d   : > { %1576 = vmatmul.mubr.msk.f32.vlgmr.msra.gmra.mrb[4].mxu0 %vm366_vm2, %v709_v60 }
 0x39e   : > { %1581 = vmatmul.mubr.msk.f32.vlgmr.msra.gmra.mrb[10].mxu1 %vm366_vm2, %v710_v61  ;;  %1591 = vmatprep.mubr.msk.f32.mxu0 %vm1833_vm0, %v1834_v1 }
 0x39f   : > { %1602 = vmatprep.mubr.msk.f32.mxu1 %vm1833_vm0, %v1834_v1  ;;  %1632 = vmatpush3.bf16.msra.mxu0 %v1631_v4 }
 0x3a0   : > { %1633 = vmatprep.subr.bf16.mxu0 %v1832_v0 }
 0x3a3   : > { %1635 = vmatpush3.bf16.msra.mxu0 %v1634_v7 }
 0x3a4   : > { %1642 = vmatprep.subr.bf16.mxu0 %v1832_v0 }
 0x3fa   : > { %v780_v62 = vpop.f32.mrb[2].mxu0 }
 0x3fb   : > { %v1567_v63 = vpop.f32.mrb[3].mxu0 }
 0x46c   : > { %v853_v9 = vpop.f32.mrb[8].mxu1 }
 0x46d   : > { %1004 = vrot.lane.b32.xlu0 %v853_v9, %s1838_s12  ;;  %v1572_v10 = vpop.f32.mrb[9].mxu1  ;;  %s1463_s12 = sshll.u32 %s1986_s26, 1 }
 0x470   : > { %v926_v11 = vpop.f32.mrb[4].mxu0 }
 0x471   : > { %v999_v12 = vpop.f32.mrb[10].mxu1  ;;  %v1577_v13 = vpop.f32.mrb[5].mxu0  ;;  %1008 = vrot.lane.b32.xlu1 %v926_v11, %s1839_s13  ;;  %s1491_s13 = sshll.u32 %s1902_s25, 5  ;;  %s1845_s25 = smov [#allocation5]  }
 0x472   : > { %v1582_v14 = vpop.f32.mrb[11].mxu1  ;;  %v1484_v13 = vld [vmem:[%s2215_s5 + $0x4] ss:$0 sm:$0xff]  ;;  %s2166_s28 = scalar_lea.hbm %s2216_s6, %s1491_s13  ;;  %s1767_s16 = sshll.u32 %s1845_s25, 4  ;;  %s1768_s16 = int_to_ptr.vmem [resolvable:$false] %s1767_s16 }
 0x473   : > { %s1769_s18 = scalar_lea.vmem %s1768_s16, 64 }
 0x475   : > { %1012 = vrot.lane.b32.xlu1 %v999_v12, %s1840_s11  ;;  %s266_s11 = scalar_lea.vmem [#allocation5], %s1463_s12 }
 0x476   : > { %s1386_s14 = sshll.u32 %s266_s11, 4  ;;  %s2168_s14 = int_to_ptr.vmem [resolvable:$true] %s1386_s14 }
 0x477   : > { %s1763_s7 = scalar_lea.vmem %s2168_s14, 32  ;;  %p1770_p7 = scmp.lt.s32.totalorder %s2168_s14, %s1768_s16 }
 0x478   : > { %p1764_p6 = scmp.ne.s32.totalorder %s2168_s14, %s1763_s7  ;;  %p1771_p10 = scmp.lt.s32.totalorder %s1769_s18, %s1763_s7 }
 0x47a   : > { %p1765_p12 = pnand %p1764_p6, %p2225_p11  ;;  %p1772_p2 = por %p1771_p10, %p1770_p7 }
 0x47c   : > { %p1766_p13 = pneg %p1765_p12 }
 0x47e   : > { %p1773_p4 = pnand %p1772_p2, %p1766_p13 }
 0x4df   : > { %v1005_v15 = vpop.permute.xlu0 %1004 }
 0x4e0   : > { %v1015_v17 = vsel %vm366_vm2, %v780_v62, %v1005_v15  ;;  %v1485_v15 = vld [vmem:[%s2215_s5 + $0x5] ss:$0 sm:$0xff] }
 0x4e3   : > { %v1009_v16 = vpop.permute.xlu1 %1008 }
 0x4e4   : > { %v1017_v18 = vsel %vm1016_vm3, %v1015_v17, %v1009_v16 }
 0x4e7   : > { %v1013_v19 = vpop.permute.xlu1 %1012 }
 0x4e8   : > { %v1019_v20 = vsel %vm1018_vm4, %v1017_v18, %v1013_v19 }
 0x4e9   : > { %1592 = vmatmul.mubr.msk.f32.vlgmr.msra.gmra.mrb[6].mxu0 %vm278_vm1, %v1019_v20 }
 0x4ea   : > { %1621 = vmatprep.mubr.msk.f32.mxu0 %vm1833_vm0, %v1834_v1  ;;  %v1123_v1 = vld [vmem:[%s2213_s3 + $0x8] sm:$0xff]  ;;  %1644 = vmatpush3.bf16.msra.mxu0 %v1643_v37 }
 0x4eb   : > { %1645 = vmatprep.subr.bf16.mxu0 %v1832_v0 }
 0x4ee   : > { %1647 = vmatpush3.bf16.msra.mxu0 %v1646_v39 }
 0x4ef   : > { %1648 = vmatprep.subr.bf16.mxu0 %v1832_v0 }
 0x4f2   : > { %1650 = vmatpush3.bf16.msra.mxu0 %v1649_v42 }
 0x4f3   : > { %1651 = vmatprep.subr.bf16.mxu0 %v1832_v0 }
 0x5bc   : > { %v1093_v21 = vpop.f32.mrb[6].mxu0 }
 0x5bd   : > { %v1097_v22 = vadd.f32 %v1093_v21, %v2013_v8  ;;  %v1593_v23 = vpop.f32.mrb[7].mxu0  ;;  %v1637_v8 = vpack.c.bf16 %v1123_v1, %v1122_v30 }
 0x5bf   : > { %v1098_v24 = vsel %vm278_vm1, %v1097_v22, 0.0  ;;  %1638 = vmatpush3.bf16.msra.mxu1 %v1637_v8 }
 0x5c0   : > { %1099 = vadd.xlane.f32.xlu0 %v1098_v24  ;;  %1639 = vmatprep.subr.bf16.mxu1 %v1832_v0  ;;  %v1210_v0 = vld [vmem:[%s2214_s4 + $0x30] sm:$0xff] }
 0x5c1   : > { %v1652_v53 = vpack.c.bf16 %v1211_v52, %v1210_v0 }
 0x5c3   : > { %1641 = vmatpush3.bf16.msra.mxu1 %v1640_v33  ;;  %1653 = vmatpush3.bf16.msra.mxu0 %v1652_v53 }
 0x64d   : > { %v1100_v25 = vpop.xlane.xlu0 %1099 }
 0x64e   : > { %v1102_v26 = vmul.f32 0.03125, %v1100_v25 }
 0x650   : > { %v1103_v27 = vsub.f32 %v1097_v22, %v1102_v26 }
 0x652   : > { %v1104_v28 = vmul.f32 %v1103_v27, %v1103_v27 }
 0x654   : > { %v1105_v29 = vsel %vm278_vm1, %v1104_v28, 0.0 }
 0x655   : > { %1106 = vadd.xlane.f32.xlu1 %v1105_v29  ;;  %v1354_v29 = vlaneseq }
 0x657   : > { %v1355_v8 = vshrl.u32 %v1354_v29, 7  ;;  %vm1368_vm7 = vcmp.lt.s32.totalorder %v1354_v29, 256 }
 0x6e2   : > { %v1107_v43 = vpop.xlane.xlu1 %1106 }
 0x6e3   : > { %v1108_v44 = vmul.f32 0.03125, %v1107_v43 }
 0x6e5   : > { %v1109_v45 = vadd.f32 1e-05, %v1108_v44 }
 0x6e7   : > { %1729 = vrsqrt.f32 %v1109_v45 }
 0x6f1   : > { %v1730_v46 = vpop.eup %1729 }
 0x6f2   : > { %v1111_v48 = vmul.f32 %v1730_v46, %v1103_v27  ;;  %v1844_v27 = vmov 1966171168  }
 0x6f3   : > { %v1352_v28 = vunpack.c.l.s4 %v1844_v27 }
 0x6f4   : > { %v1116_v50 = vmul.f32 %v1478_v47, %v1111_v48 }
 0x6f5   : > { %v1353_v1 = vunpack.c.0.s8 %v1352_v28 }
 0x6f6   : > { %v1121_v51 = vadd.f32 %v1479_v49, %v1116_v50 }
 0x6f7   : > { %v1356_v37 = vsub.s32 %v1353_v1, %v1355_v8 }
 0x6f8   : > { %1603 = vmatmul.mubr.msk.f32.vlgmr.msra.gmra.mrb[12].mxu1 %vm278_vm1, %v1121_v51 }
 0x7cb   : > { %v1199_v55 = vpop.f32.mrb[12].mxu1 }
 0x7cc   : > { %v1200_v56 = vadd.f32 %v1480_v54, %v1199_v55  ;;  %v1604_v57 = vpop.f32.mrb[13].mxu1 }
 0x7ce   : > { %v1203_v58 = vmax.f32 %v1200_v56, 0.0 }
 0x7d0   : > { %1622 = vmatmul.mubr.msk.f32.vlgmr.msra.gmra.mrb[8].mxu0 %vm1216_vm5, %v1203_v58 }
 0x8a3   : > { %v1286_v60 = vpop.f32.mrb[8].mxu0 }
 0x8a4   : > { %v1287_v61 = vadd.f32 %v1482_v59, %v1286_v60  ;;  %v1623_v62 = vpop.f32.mrb[9].mxu0 }
 0x8a6   : > { %v1290_v63 = vadd.f32 %v1287_v61, %v1121_v51 }
 0x8a8   : > { %v1291_v2 = vsel %vm278_vm1, %v1290_v63, 0.0 }
 0x8a9   : > { %1292 = vadd.xlane.f32.xlu0 %v1291_v2 }
 0x936   : > { %v1293_v3 = vpop.xlane.xlu0 %1292 }
 0x937   : > { %v1294_v4 = vmul.f32 0.03125, %v1293_v3 }
 0x939   : > { %v1295_v5 = vsub.f32 %v1290_v63, %v1294_v4 }
 0x93b   : > { %v1296_v6 = vmul.f32 %v1295_v5, %v1295_v5 }
 0x93d   : > { %v1297_v7 = vsel %vm278_vm1, %v1296_v6, 0.0 }
 0x93e   : > { %1298 = vadd.xlane.f32.xlu0 %v1297_v7 }
 0x9cb   : > { %v1299_v9 = vpop.xlane.xlu0 %1298 }
 0x9cc   : > { %v1300_v10 = vmul.f32 0.03125, %v1299_v9 }
 0x9ce   : > { %v1301_v11 = vadd.f32 1e-05, %v1300_v10 }
 0x9d0   : > { %1731 = vrsqrt.f32 %v1301_v11 }
 0x9da   : > { %v1732_v12 = vpop.eup %1731 }
 0x9db   : > { %v1303_v14 = vmul.f32 %v1732_v12, %v1295_v5 }
 0x9dd   : > { %v1308_v16 = vmul.f32 %v1484_v13, %v1303_v14 }
 0x9df   : > { %v1313_v17 = vadd.f32 %v1485_v15, %v1308_v16 }
 0x9e1   : > { %v1329_v18 = vrot.slane %v1313_v17, 5  ;;  %v1315_v19 = vrot.slane %v1313_v17, 1  ;;  %v1323_v20 = vrot.slane %v1313_v17, 3  ;;  %v1319_v21 = vrot.slane %v1313_v17, 2 }
 0x9e2   : > { %v1333_v22 = vrot.slane %v1313_v17, 6  ;;  %v1337_v23 = vrot.slane %v1313_v17, 7  ;;  %v1327_v31 = vrot.slane %v1313_v17, 4 }
 0x9e3   : > { %1330 = vrot.lane.b32.xlu0 %v1329_v18, %s1841_s19  ;;  %1316 = vrot.lane.b32.xlu1 %v1315_v19, %s1841_s19 }
 0x9e7   : > { %1324 = vrot.lane.b32.xlu0 %v1323_v20, %s1842_s8  ;;  %1320 = vrot.lane.b32.xlu1 %v1319_v21, %s1843_s20 }
 0x9eb   : > { %1334 = vrot.lane.b32.xlu1 %v1333_v22, %s1843_s20 }
 0x9ef   : > { %1338 = vrot.lane.b32.xlu1 %v1337_v23, %s1842_s8 }
 0xa55   : > { %v1317_v24 = vpop.permute.xlu1 %1316  ;;  %v1331_v25 = vpop.permute.xlu0 %1330 }
 0xa56   : > { %v1341_v32 = vsel %vm278_vm1, %v1313_v17, %v1317_v24  ;;  %v1345_v35 = vsel %vm278_vm1, %v1327_v31, %v1331_v25 }
 0xa59   : > { %v1321_v26 = vpop.permute.xlu1 %1320  ;;  %v1325_v33 = vpop.permute.xlu0 %1324 }
 0xa5a   : > { %v1342_v34 = vsel %vm1216_vm5, %v1341_v32, %v1321_v26 }
 0xa5b   : > { %v1344_v39 = vsel %vm1343_vm6, %v1342_v34, %v1325_v33 }
 0xa5d   : > { %v1335_v30 = vpop.permute.xlu1 %1334 }
 0xa5e   : > { %v1346_v36 = vsel %vm1216_vm5, %v1345_v35, %v1335_v30 }
 0xa61   : > { %v1339_v38 = vpop.permute.xlu1 %1338 }
 0xa62   : > { %v1347_v40 = vsel %vm1343_vm6, %v1346_v36, %v1339_v38 }
 0xa63   : > { %v1350_v41 = vcombine.low %v1344_v39, %v1347_v40 }
 0xa65   : > { %v1357_v42 = vrot.slane %v1350_v41, %v1356_v37 }
 0xa67   : > { %v1364_v43 = vrot.slane %v1357_v42, %v1356_v37 }
 0xa69   : > { %1370 = vst.msk [vmem:[%s266_s11] sm:$0x3] %vm1368_vm7, %v1364_v43 }
 0xa6a   : > { %1776 = shalt.err (!%p1773_p4)
}
 0xa6b   : > { %s1777_s26 = scalar_lea.hbm %s2166_s28, 32  ;;  %s1781_s20 = scalar_lea.hbm %s2216_s6, 64 }
 0xa6c   : > { %p1778_p5 = scmp.ne.s32.totalorder %s2166_s28, %s1777_s26  ;;  %p1782_p0 = scmp.lt.u32.totalorder %s2166_s28, %s2216_s6 }
 0xa6d   : > { %p1783_p1 = scmp.lt.u32.totalorder %s1781_s20, %s1777_s26  ;;  %p1785_p6 = scmp.lt.u32.totalorder %s1777_s26, %s2166_s28 }
 0xa6e   : > { %p1779_p8 = pnand %p1778_p5, %p2225_p11 }
 0xa6f   : > { %p1784_p3 = por %p1783_p1, %p1782_p0 }
 0xa70   : > { %p1780_p9 = pneg %p1779_p8 }
 0xa71   : > { %p1786_p12 = por %p1785_p6, %p1784_p3 }
 0xa73   : > { %p1787_p13 = pnand %p1786_p12, %p1780_p9 }
 0xa75   : > { %1790 = shalt.err (!%p1787_p13)
}
 0xa76   : > { %1656 = dma.vmem_to_hbm [thread:$0]  (%p2225_p11), %s2168_s14, 32, %s2166_s28, %s1372_s29  }
 0xa77 PF: > { %s1398_s11 = sand.u32 1, %s1817_s21   ;;  %p2226_p7 = scmp.ne.s32.totalorder %s2221_s10, 0 }
 0xa78   : > { %p2227_p10 = scmp.ge.s32.totalorder %s1829_s24, 2  ;;  %s1399_s15 = scalar_lea.sflag [#allocation4], %s1398_s11 }
 0xa7a   : > { %p1663_p2 = pnand %p2227_p10, %p2226_p7 }
 0xa7c   : > { %1812 = dma.done.wait (!%p1663_p2), %s1399_s15, 32  }
 0xa7d   : > { %1814 = vsyncadd (!%p1663_p2), %s1399_s15, 4294967264  ;;  %p19_p4 = scmp.ge.s32.totalorder %s1906_s27, 4   ;;  %s2228_s21 = smov %s1821_s22 }
 0xa7e   : > { %s2229_s22 = smov %s1825_s23  ;;  %s2230_s23 = smov %s1918_s30 }
 0xa7f   : > { %s2231_s24 = smov %s1906_s27  ;;  %21 = sbr.rel (!%p19_p4) target bundleno = 5 (0x5), region = 89 }
 0xa86   :  { %1404 = vsyncpa [#allocation3], 1 }
 0xa87   :  { %1406 = vsyncpa [#allocation3 + $0x1], 1 }
 0xa88   :  { %1407 = vsyncpa [#allocation4], 1 }
 0xa89   :  { %1409 = vsyncpa [#allocation4 + $0x1], 1 }

</bundles_post_ra>
